<compile_context>
chip_gen: v7x
topology: tpu7x:2x2x1
jax: 0.10.0
libtpu: 0.0.40
codegen_flags: <defaults>
</compile_context>

<pallas_src>
import jax
import jax.numpy as jnp
from jax import lax
from jax.experimental import pallas as pl
from jax.experimental.pallas import tpu as pltpu


# --------------------------------- kernel ------------------------------------

def _make_kernel(K, dil, pad, TL, Hh, has_downsample):
    """Fused kernel for one (batch, L-tile) grid step. All args static."""
    TLp = TL + pad            # conv1 rows per tile: TL outputs + pad causal history
    OFF = Hh - 2 * pad        # 0 unless pad == 0 (degenerate kernel_size == 1)

    def conv_stack(i, halo_ref, x_ref, w1_ref, b1_ref, w2_ref, b2_ref,
                   xin_ref, h1_ref):
        # Assemble the causal input slab in VMEM (all-VMEM, no HBM round trip):
        #   xin[v] = x[i*TL - Hh + v]   (zeros before t = 0),   v in [0, TL + Hh)
        xin_ref[pl.ds(0, Hh), :] = halo_ref[0, 0]
        xin_ref[pl.ds(Hh, TL), :] = x_ref[0]

        # ---- conv1: causal dilated conv + bias + ReLU -----------------------
        # h1[u] covers global time i*TL - pad + u,  u in [0, TL + pad).
        acc1 = jnp.dot(xin_ref[pl.ds(OFF, TLp), :], w1_ref[0],
                       preferred_element_type=jnp.float32)
        for k in range(1, K):
            acc1 += jnp.dot(xin_ref[pl.ds(OFF + k * dil, TLp), :], w1_ref[k],
                            preferred_element_type=jnp.float32)
        # TODO(synk): dropout1/dropout2 are identity (inference semantics).
        h1_ref[...] = jnp.maximum(acc1 + b1_ref[...], 0.0).astype(h1_ref.dtype)

        if pad > 0:
            # conv2's input must be zero for t < 0 (chomp semantics), not
            # relu(b1).  Only tiles with i*TL < pad (normally tile 0) pay this.
            @pl.when(i * TL < pad)
            def _():
                u = lax.broadcasted_iota(jnp.int32, (TLp, 1), 0)
                h1_ref[...] = jnp.where(u + i * TL < pad,
                                        jnp.zeros((), h1_ref.dtype), h1_ref[...])

        # ---- conv2: causal dilated conv + bias + ReLU -----------------------
        acc2 = jnp.dot(h1_ref[pl.ds(0, TL), :], w2_ref[0],
                       preferred_element_type=jnp.float32)
        for k in range(1, K):
            acc2 += jnp.dot(h1_ref[pl.ds(k * dil, TL), :], w2_ref[k],
                            preferred_element_type=jnp.float32)
        return jnp.maximum(acc2 + b2_ref[...], 0.0)

    if has_downsample:
        def kernel(halo_ref, x_ref, w1_ref, b1_ref, w2_ref, b2_ref,
                   wd_ref, bd_ref, o_ref, xin_ref, h1_ref):
            i = pl.program_id(1)
            h2 = conv_stack(i, halo_ref, x_ref, w1_ref, b1_ref, w2_ref, b2_ref,
                            xin_ref, h1_ref)
            # residual: 1x1 conv downsample
            res = jnp.dot(x_ref[0], wd_ref[...],
                          preferred_element_type=jnp.float32) + bd_ref[...]
            o_ref[0] = jnp.maximum(h2 + res, 0.0).astype(o_ref.dtype)
    else:
        def kernel(halo_ref, x_ref, w1_ref, b1_ref, w2_ref, b2_ref,
                   o_ref, xin_ref, h1_ref):
            i = pl.program_id(1)
            h2 = conv_stack(i, halo_ref, x_ref, w1_ref, b1_ref, w2_ref, b2_ref,
                            xin_ref, h1_ref)
            # identity skip: direct add of the x body block, no eye() matmul.
            res = x_ref[0].astype(jnp.float32)
            o_ref[0] = jnp.maximum(h2 + res, 0.0).astype(o_ref.dtype)

    return kernel


# -------------------------------- wrappers -----------------------------------

def _round_up(a, m):
    return ((a + m - 1) // m) * m


def _const_index_map(nd):
    def imap(b, i):
        return (0,) * nd
    return imap


def _choose_tile(L, Cin, Cout, pad, itemsize, tl=None):
    """Pick the L-tile from a VMEM / accumulator budget instead of a fixed cap."""
    if tl is None:
        # Row-proportional bytes per grid step: double-buffered x body + output
        # blocks, xin/h1 scratch and the f32 accumulators.
        per_row = 3 * Cin * itemsize + Cout * itemsize + 3 * Cout * 4
        cap_mem = (6 * 2 ** 20) // max(per_row, 1)          # ~6 MiB activations
        # Keep the (TL+pad, Cout) f32 accumulator roughly within the vreg file.
        cap_acc = max(64, (256 * 1024) // max(4 * Cout, 1))
        tl = int(min(4096, cap_mem, cap_acc))
    tl = max(8, (int(tl) // 8) * 8)                          # sublane alignment
    tl = min(tl, _round_up(L, 8))                            # never exceed padded L
    return tl


def temporal_block_forward_nlc(x_nlc, params, kernel_size, dilation, stride=1, *,
                               compute_dtype=jnp.bfloat16, out_dtype=jnp.float32,
                               tl=None, single_buffer_weights=False):
    """Fused TemporalBlock forward, time-major input x_nlc: (B, L, C_in).

    params = (w1, b1, w2, b2, wd, bd) in PyTorch layouts (weight_norm folded):
      w1: (C_out, C_in, K),  b1: (C_out,)
      w2: (C_out, C_out, K), b2: (C_out,)
      wd: (C_out, C_in, 1) or None (identity residual), bd: (C_out,) or None
    Returns (B, L, C_out) in out_dtype.
    """
    # TODO(synk): stride != 1 unsupported (the module's chomp logic assumes stride 1).
    assert stride == 1
    w1, b1, w2, b2, wd, bd = params
    B, L, Cin = x_nlc.shape
    Cout = w1.shape[0]
    K = kernel_size
    pad = (K - 1) * dilation
    has_downsample = wd is not None
    if not has_downsample:
        assert Cin == Cout, "identity residual requires n_inputs == n_outputs"

    cd = jnp.dtype(compute_dtype)
    od = jnp.dtype(out_dtype)
    it = cd.itemsize

    TL = _choose_tile(L, Cin, Cout, pad, it, tl)
    Lp = _round_up(L, TL)                  # pad L to a tile multiple (causal conv:
    nL = Lp // TL                          #  the zero tail cannot affect t < L)
    Hh = 2 * pad if pad > 0 else 8         # causal halo rows carried per tile

    x = x_nlc.astype(cd)                                        # (B, L, Cin)
    if Lp != L:
        x = jnp.pad(x, ((0, 0), (0, Lp - L), (0, 0)))           # (B, Lp, Cin)

    # Per-tile causal halo: halo[b, i, r] = x[b, i*TL - Hh + r] (zeros for t < 0).
    row = (jnp.arange(nL) * TL)[:, None] + jnp.arange(Hh)[None, :] - Hh   # (nL, Hh)
    halo = jnp.take(x, jnp.clip(row, 0, Lp - 1), axis=1)        # (B, nL, Hh, Cin)
    halo = jnp.where((row >= 0)[None, :, :, None], halo, jnp.zeros((), cd))

    # Re-layout parameters for channels-last matmuls; cast MXU operands to cd.
    w1k = jnp.transpose(w1, (2, 1, 0)).astype(cd)               # (K, Cin, Cout)
    w2k = jnp.transpose(w2, (2, 1, 0)).astype(cd)               # (K, Cout, Cout)
    b1k = b1.reshape(1, -1).astype(jnp.float32)
    b2k = b2.reshape(1, -1).astype(jnp.float32)

    # Grid-invariant operands may be single-buffered to halve their VMEM
    # footprint (matters for big C on v7x's 64 MiB VMEM).  Off by default.
    wpm = pl.Buffered(1) if single_buffer_weights else None

    def const_spec(shape):
        return pl.BlockSpec(shape, _const_index_map(len(shape)), pipeline_mode=wpm)

    in_specs = [
        pl.BlockSpec((1, 1, Hh, Cin), lambda b, i: (b, i, 0, 0)),   # causal halo
        pl.BlockSpec((1, TL, Cin), lambda b, i: (b, i, 0)),         # x body
        const_spec((K, Cin, Cout)),                                 # conv1 taps
        const_spec((1, Cout)),                                      # conv1 bias
        const_spec((K, Cout, Cout)),                                # conv2 taps
        const_spec((1, Cout)),                                      # conv2 bias
    ]
    args = [halo, x, w1k, b1k, w2k, b2k]
    if has_downsample:
        wdk = wd[:, :, 0].T.astype(cd)                              # (Cin, Cout)
        bdk = bd.reshape(1, -1).astype(jnp.float32)
        in_specs += [const_spec((Cin, Cout)), const_spec((1, Cout))]
        args += [wdk, bdk]

    kernel = _make_kernel(K, dilation, pad, TL, Hh, has_downsample)

    # Explicit scoped-VMEM budget from the per-step footprint, clamped below the
    # physical capacity minus headroom for compiler-internal scratch.
    w_bytes = (K * Cin * Cout + K * Cout * Cout) * it + 2 * Cout * 4
    if has_downsample:
        w_bytes += Cin * Cout * it + Cout * 4
    n_wbuf = 1 if single_buffer_weights else 2
    per_step = (n_wbuf * w_bytes
                + 2 * (Hh * Cin + TL * Cin) * it          # halo + body blocks
                + 2 * TL * Cout * od.itemsize             # output block
                + (TL + Hh) * Cin * it                    # xin scratch
                + (TL + pad) * Cout * it                  # h1 scratch
                + 2 * (TL + pad) * Cout * 4)              # f32 accumulators
    try:
        vmem_cap = int(pltpu.get_tpu_info().vmem_capacity_bytes)
    except Exception:
        vmem_cap = 64 * 2 ** 20
    vmem_limit = int(min(max(16 * 2 ** 20, 4 * per_step),
                         max(16 * 2 ** 20, vmem_cap - 16 * 2 ** 20)))

    mm_flops = 2 * K * Cin * Cout + 2 * K * Cout * Cout
    if has_downsample:
        mm_flops += 2 * Cin * Cout
    cost = pl.CostEstimate(
        flops=int(B * Lp * mm_flops),
        transcendentals=0,
        bytes_accessed=int(x.size * it + halo.size * it
                           + (w1k.size + w2k.size) * it
                           + B * Lp * Cout * od.itemsize),
    )

    out = pl.pallas_call(
        kernel,
        out_shape=jax.ShapeDtypeStruct((B, Lp, Cout), od),
        grid_spec=pltpu.PrefetchScalarGridSpec(
            num_scalar_prefetch=0,
            grid=(B, nL),
            in_specs=in_specs,
            out_specs=pl.BlockSpec((1, TL, Cout), lambda b, i: (b, i, 0)),
            scratch_shapes=[
                pltpu.VMEM((TL + Hh, Cin), cd),     # causal input slab
                pltpu.VMEM((TL + pad, Cout), cd),   # conv1 output (+ causal history)
            ],
        ),
        compiler_params=pltpu.CompilerParams(
            dimension_semantics=("parallel", "parallel"),
            vmem_limit_bytes=vmem_limit,
        ),
        cost_estimate=cost,
    )(*args)

    if Lp != L:
        out = out[:, :L, :]
    return out


def temporal_block_forward(x_ncw, params, kernel_size, dilation, stride=1, **kw):
    """PyTorch NCW interface: x_ncw (B, C_in, L) -> (B, C_out, L).

    The two transposes exist only to match the nn.Module layout; keep the
    surrounding model time-major and call temporal_block_forward_nlc to avoid
    the extra HBM passes.
    """
    x_nlc = jnp.transpose(x_ncw, (0, 2, 1))
    y = temporal_block_forward_nlc(x_nlc, params, kernel_size, dilation, stride, **kw)
    return jnp.transpose(y, (0, 2, 1))


# -------------------------- parameter construction ---------------------------

def _weight_norm(v, g):
    # nn.utils.weight_norm default dim=0: per-output-channel norm over (C_in, K)
    nrm = jnp.sqrt(jnp.sum(v * v, axis=(1, 2), keepdims=True))
    return g * v / nrm


def init_params(key, n_inputs, n_outputs, kernel_size):
    """Deterministic synthetic parameters in PyTorch layouts (weight_norm folded)."""
    ks = jax.random.split(key, 8)
    v1 = 0.3 * jax.random.normal(ks[0], (n_outputs, n_inputs, kernel_size), jnp.float32)
    g1 = jax.random.uniform(ks[1], (n_outputs, 1, 1), jnp.float32, 0.5, 1.5)
    b1 = 0.1 * jax.random.normal(ks[2], (n_outputs,), jnp.float32)
    v2 = 0.3 * jax.random.normal(ks[3], (n_outputs, n_outputs, kernel_size), jnp.float32)
    g2 = jax.random.uniform(ks[4], (n_outputs, 1, 1), jnp.float32, 0.5, 1.5)
    b2 = 0.1 * jax.random.normal(ks[5], (n_outputs,), jnp.float32)
    wd = 0.3 * jax.random.normal(ks[6], (n_outputs, n_inputs, 1), jnp.float32)
    bd = 0.1 * jax.random.normal(ks[7], (n_outputs,), jnp.float32)
    return _weight_norm(v1, g1), b1, _weight_norm(v2, g2), b2, wd, bd


# ------------------------------ pure-JAX reference ----------------------------

def reference_forward(x, w1, b1, w2, b2, wd, bd, dilation, pad,
                      compute_dtype=jnp.float32):
    """NCW reference; mirrors the kernel's compute-dtype rounding points."""
    rd = lambda a: a.astype(compute_dtype).astype(jnp.float32)

    def conv1d(x_, w_, b_, dil, p):
        y = lax.conv_general_dilated(
            x_, w_, window_strides=(1,), padding=[(p, p)], rhs_dilation=(dil,),
            dimension_numbers=("NCH", "OIH", "NCH"),
            precision=lax.Precision.HIGHEST)
        return y + b_[None, :, None]

    xr = rd(x)
    out = conv1d(xr, rd(w1), b1, dilation, pad)
    if pad > 0:
        out = out[:, :, :-pad]
    out = jax.nn.relu(out)
    out = rd(out)                       # kernel stores conv1 output in compute dtype
    out = conv1d(out, rd(w2), b2, dilation, pad)
    if pad > 0:
        out = out[:, :, :-pad]
    out = jax.nn.relu(out)
    res = rd(x) if wd is None else conv1d(xr, rd(wd), bd, 1, 0)
    return jax.nn.relu(out + res)


# ----------------------------------- demo ------------------------------------

if __name__ == "__main__":
    # TemporalBlock: n_inputs=4, n_outputs=8, kernel_size=3, stride=1, dilation=2
    # => padding = 4.  Input x: (B=2, C_in=4, L=32).
    B, Cin, Cout, L = 2, 4, 8, 32
    K, dilation, stride = 3, 2, 1
    pad = (K - 1) * dilation

    key = jax.random.PRNGKey(0)
    kx, kp = jax.random.split(key)
    x = jax.random.normal(kx, (B, Cin, L), jnp.float32)
    params = init_params(kp, Cin, Cout, K)
    w1, b1, w2, b2, wd, bd = params

    # --- f32 path, 2 L-tiles (exercises the causal halo + tile-0 pl.when mask) --
    y32 = temporal_block_forward(x, params, K, dilation, stride,
                                 compute_dtype=jnp.float32, tl=16)
    y32 = jax.block_until_ready(y32)
    ref32 = reference_forward(x, w1, b1, w2, b2, wd, bd, dilation, pad,
                              compute_dtype=jnp.float32)
    assert y32.shape == (B, Cout, L)
    err32 = float(jnp.max(jnp.abs(y32 - ref32)))
    assert jnp.allclose(y32, ref32, atol=1e-4, rtol=1e-4), f"f32 max err {err32}"

    # --- bf16 MXU path (f32 accumulation), auto tile size ---------------------
    y16 = temporal_block_forward(x, params, K, dilation, stride,
                                 compute_dtype=jnp.bfloat16)
    y16 = jax.block_until_ready(y16)
    ref16 = reference_forward(x, w1, b1, w2, b2, wd, bd, dilation, pad,
                              compute_dtype=jnp.bfloat16)
    err16 = float(jnp.max(jnp.abs(y16 - ref16)))
    assert jnp.allclose(y16, ref16, atol=3e-2, rtol=3e-2), f"bf16 max err {err16}"

    # --- identity-residual path + ragged L (exercises L padding to tiles) -----
    Lr = 40                                        # not a multiple of the 16-row tile
    w1s, b1s, w2s, b2s, _, _ = init_params(kp, Cout, Cout, K)
    xs = jax.random.normal(kx, (B, Cout, Lr), jnp.float32)
    ys = temporal_block_forward(xs, (w1s, b1s, w2s, b2s, None, None),
                                K, dilation, stride,
                                compute_dtype=jnp.float32, tl=16)
    ys = jax.block_until_ready(ys)
    refs = reference_forward(xs, w1s, b1s, w2s, b2s, None, None, dilation, pad,
                             compute_dtype=jnp.float32)
    assert ys.shape == (B, Cout, Lr)
    errs = float(jnp.max(jnp.abs(ys - refs)))
    assert jnp.allclose(ys, refs, atol=1e-4, rtol=1e-4), f"id-res max err {errs}"

    print("KERNEL_OK")
</pallas_src>

<mosaic_0001>
module attributes {stable_mosaic.version = 11 : i64} {
  func.func @kernel(%arg0: i32, %arg1: i32, %arg2: memref<1x1x8x4xf32, #tpu.memory_space<vmem>>, %arg3: memref<1x16x4xf32, #tpu.memory_space<vmem>>, %arg4: memref<3x4x8xf32, #tpu.memory_space<vmem>>, %arg5: memref<1x8xf32, #tpu.memory_space<vmem>>, %arg6: memref<3x8x8xf32, #tpu.memory_space<vmem>>, %arg7: memref<1x8xf32, #tpu.memory_space<vmem>>, %arg8: memref<4x8xf32, #tpu.memory_space<vmem>>, %arg9: memref<1x8xf32, #tpu.memory_space<vmem>>, %arg10: memref<1x16x8xf32, #tpu.memory_space<vmem>>, %arg11: memref<24x4xf32, #tpu.memory_space<vmem>>, %arg12: memref<20x8xf32, #tpu.memory_space<vmem>>) attributes {dimension_semantics = [#tpu.dimension_semantics<parallel>, #tpu.dimension_semantics<parallel>], iteration_bounds = array<i64: 2, 2>, scalar_prefetch = 0 : i64, scratch_operands = 2 : i64, tpu.core_type = #tpu.core_type<tc>, window_params = [{transform_indices = @transform_0, window_bounds = array<i64: 1, 1, 8, 4>}, {transform_indices = @transform_1, window_bounds = array<i64: 1, 16, 4>}, {pipeline_mode = #tpu.pipeline_mode<synchronous>, transform_indices = @transform_2, window_bounds = array<i64: 3, 4, 8>}, {pipeline_mode = #tpu.pipeline_mode<synchronous>, transform_indices = @transform_3, window_bounds = array<i64: 1, 8>}, {pipeline_mode = #tpu.pipeline_mode<synchronous>, transform_indices = @transform_4, window_bounds = array<i64: 3, 8, 8>}, {pipeline_mode = #tpu.pipeline_mode<synchronous>, transform_indices = @transform_5, window_bounds = array<i64: 1, 8>}, {pipeline_mode = #tpu.pipeline_mode<synchronous>, transform_indices = @transform_6, window_bounds = array<i64: 4, 8>}, {pipeline_mode = #tpu.pipeline_mode<synchronous>, transform_indices = @transform_7, window_bounds = array<i64: 1, 8>}, {transform_indices = @transform_8, window_bounds = array<i64: 1, 16, 8>}]} {
    %c0 = arith.constant 0 : index
    %c0_0 = arith.constant 0 : index
    %c0_1 = arith.constant 0 : index
    %c0_2 = arith.constant 0 : index
    %0 = vector.load %arg2[%c0, %c0_0, %c0_1, %c0_2] : memref<1x1x8x4xf32, #tpu.memory_space<vmem>>, vector<1x1x8x4xf32>
    %1 = vector.shape_cast %0 : vector<1x1x8x4xf32> to vector<8x4xf32>
    %c0_3 = arith.constant 0 : index
    %c0_4 = arith.constant 0 : index
    %2 = vector.load %arg11[%c0_3, %c0_4] : memref<24x4xf32, #tpu.memory_space<vmem>>, vector<8x4xf32>
    tpu.vector_store %arg11[%c0_3, %c0_4], %1 {strides = array<i32>} : memref<24x4xf32, #tpu.memory_space<vmem>>, vector<8x4xf32>,
    %c0_5 = arith.constant 0 : index
    %c0_6 = arith.constant 0 : index
    %c0_7 = arith.constant 0 : index
    %3 = vector.load %arg3[%c0_5, %c0_6, %c0_7] : memref<1x16x4xf32, #tpu.memory_space<vmem>>, vector<1x16x4xf32>
    %4 = vector.shape_cast %3 : vector<1x16x4xf32> to vector<16x4xf32>
    %c8 = arith.constant 8 : index
    %c0_8 = arith.constant 0 : index
    %5 = vector.load %arg11[%c8, %c0_8] : memref<24x4xf32, #tpu.memory_space<vmem>>, vector<16x4xf32>
    tpu.vector_store %arg11[%c8, %c0_8], %4 {strides = array<i32>} : memref<24x4xf32, #tpu.memory_space<vmem>>, vector<16x4xf32>,
    %c0_9 = arith.constant 0 : index
    %c0_10 = arith.constant 0 : index
    %6 = vector.load %arg11[%c0_9, %c0_10] : memref<24x4xf32, #tpu.memory_space<vmem>>, vector<20x4xf32>
    %c0_11 = arith.constant 0 : index
    %c0_12 = arith.constant 0 : index
    %c0_13 = arith.constant 0 : index
    %7 = vector.load %arg4[%c0_11, %c0_12, %c0_13] : memref<3x4x8xf32, #tpu.memory_space<vmem>>, vector<1x4x8xf32>
    %8 = vector.shape_cast %7 : vector<1x4x8xf32> to vector<4x8xf32>
    %cst = arith.constant dense<0.000000e+00> : vector<20x8xf32>
    %9 = tpu.matmul %6, %8, %cst {dimension_numbers = #tpu.dot_dimension_numbers<[1], [0], [0], [1], [0, 0, 1, 1], [], []>} : vector<20x4xf32>, vector<4x8xf32>, vector<20x8xf32> -> vector<20x8xf32>
    %c2 = arith.constant 2 : index
    %c0_14 = arith.constant 0 : index
    %10 = vector.load %arg11[%c2, %c0_14] : memref<24x4xf32, #tpu.memory_space<vmem>>, vector<20x4xf32>
    %c1 = arith.constant 1 : index
    %c0_15 = arith.constant 0 : index
    %c0_16 = arith.constant 0 : index
    %11 = vector.load %arg4[%c1, %c0_15, %c0_16] : memref<3x4x8xf32, #tpu.memory_space<vmem>>, vector<1x4x8xf32>
    %12 = vector.shape_cast %11 : vector<1x4x8xf32> to vector<4x8xf32>
    %cst_17 = arith.constant dense<0.000000e+00> : vector<20x8xf32>
    %13 = tpu.matmul %10, %12, %cst_17 {dimension_numbers = #tpu.dot_dimension_numbers<[1], [0], [0], [1], [0, 0, 1, 1], [], []>} : vector<20x4xf32>, vector<4x8xf32>, vector<20x8xf32> -> vector<20x8xf32>
    %14 = arith.addf %9, %13 : vector<20x8xf32>
    %c4 = arith.constant 4 : index
    %c0_18 = arith.constant 0 : index
    %15 = vector.load %arg11[%c4, %c0_18] : memref<24x4xf32, #tpu.memory_space<vmem>>, vector<20x4xf32>
    %c2_19 = arith.constant 2 : index
    %c0_20 = arith.constant 0 : index
    %c0_21 = arith.constant 0 : index
    %16 = vector.load %arg4[%c2_19, %c0_20, %c0_21] : memref<3x4x8xf32, #tpu.memory_space<vmem>>, vector<1x4x8xf32>
    %17 = vector.shape_cast %16 : vector<1x4x8xf32> to vector<4x8xf32>
    %cst_22 = arith.constant dense<0.000000e+00> : vector<20x8xf32>
    %18 = tpu.matmul %15, %17, %cst_22 {dimension_numbers = #tpu.dot_dimension_numbers<[1], [0], [0], [1], [0, 0, 1, 1], [], []>} : vector<20x4xf32>, vector<4x8xf32>, vector<20x8xf32> -> vector<20x8xf32>
    %19 = arith.addf %14, %18 : vector<20x8xf32>
    %c0_23 = arith.constant 0 : index
    %c0_24 = arith.constant 0 : index
    %20 = vector.load %arg5[%c0_23, %c0_24] : memref<1x8xf32, #tpu.memory_space<vmem>>, vector<1x8xf32>
    %21 = vector.broadcast %20 : vector<1x8xf32> to vector<20x8xf32>
    %22 = arith.addf %19, %21 : vector<20x8xf32>
    %cst_25 = arith.constant 0.000000e+00 : f32
    %23 = vector.broadcast %cst_25 : f32 to vector<20x8xf32>
    %24 = arith.maximumf %22, %23 : vector<20x8xf32>
    %c0_26 = arith.constant 0 : index
    %c0_27 = arith.constant 0 : index
    %25 = vector.load %arg12[%c0_26, %c0_27] : memref<20x8xf32, #tpu.memory_space<vmem>>, vector<20x8xf32>
    tpu.vector_store %arg12[%c0_26, %c0_27], %24 {strides = array<i32>} : memref<20x8xf32, #tpu.memory_space<vmem>>, vector<20x8xf32>,
    %c16_i32 = arith.constant 16 : i32
    %26 = arith.muli %arg1, %c16_i32 : i32
    %c4_i32 = arith.constant 4 : i32
    %27 = arith.cmpi slt, %26, %c4_i32 : i32
    %28 = arith.extui %27 : i1 to i32
    %c0_i32 = arith.constant 0 : i32
    %29 = arith.cmpi ne, %28, %c0_i32 : i32
    scf.if %29 {
      %62 = tpu.iota {dimensions = array<i32: 0>} : vector<20x1xi32>
      %c16_i32_61 = arith.constant 16 : i32
      %63 = arith.muli %arg1, %c16_i32_61 : i32
      %64 = vector.broadcast %63 : i32 to vector<20x1xi32>
      %65 = arith.addi %62, %64 : vector<20x1xi32>
      %c4_i32_62 = arith.constant 4 : i32
      %66 = vector.broadcast %c4_i32_62 : i32 to vector<20x1xi32>
      %67 = arith.cmpi slt, %65, %66 : vector<20x1xi32>
      %c0_63 = arith.constant 0 : index
      %c0_64 = arith.constant 0 : index
      %68 = vector.load %arg12[%c0_63, %c0_64] : memref<20x8xf32, #tpu.memory_space<vmem>>, vector<20x8xf32>
      %cst_65 = arith.constant 0.000000e+00 : f32
      %69 = vector.shape_cast %67 : vector<20x1xi1> to vector<20x1xi1>
      %70 = vector.broadcast %69 : vector<20x1xi1> to vector<20x8xi1>
      %71 = vector.broadcast %cst_65 : f32 to vector<20x8xf32>
      %72 = arith.select %70, %71, %68 : vector<20x8xi1>, vector<20x8xf32>
      %c0_66 = arith.constant 0 : index
      %c0_67 = arith.constant 0 : index
      %73 = vector.load %arg12[%c0_66, %c0_67] : memref<20x8xf32, #tpu.memory_space<vmem>>, vector<20x8xf32>
      tpu.vector_store %arg12[%c0_66, %c0_67], %72 {strides = array<i32>} : memref<20x8xf32, #tpu.memory_space<vmem>>, vector<20x8xf32>,
    } else {
    }
    %c0_28 = arith.constant 0 : index
    %c0_29 = arith.constant 0 : index
    %30 = vector.load %arg12[%c0_28, %c0_29] : memref<20x8xf32, #tpu.memory_space<vmem>>, vector<16x8xf32>
    %c0_30 = arith.constant 0 : index
    %c0_31 = arith.constant 0 : index
    %c0_32 = arith.constant 0 : index
    %31 = vector.load %arg6[%c0_30, %c0_31, %c0_32] : memref<3x8x8xf32, #tpu.memory_space<vmem>>, vector<1x8x8xf32>
    %32 = vector.shape_cast %31 : vector<1x8x8xf32> to vector<8x8xf32>
    %cst_33 = arith.constant dense<0.000000e+00> : vector<16x8xf32>
    %33 = tpu.matmul %30, %32, %cst_33 {dimension_numbers = #tpu.dot_dimension_numbers<[1], [0], [0], [1], [0, 0, 1, 1], [], []>} : vector<16x8xf32>, vector<8x8xf32>, vector<16x8xf32> -> vector<16x8xf32>
    %c2_34 = arith.constant 2 : index
    %c0_35 = arith.constant 0 : index
    %34 = vector.load %arg12[%c2_34, %c0_35] : memref<20x8xf32, #tpu.memory_space<vmem>>, vector<16x8xf32>
    %c1_36 = arith.constant 1 : index
    %c0_37 = arith.constant 0 : index
    %c0_38 = arith.constant 0 : index
    %35 = vector.load %arg6[%c1_36, %c0_37, %c0_38] : memref<3x8x8xf32, #tpu.memory_space<vmem>>, vector<1x8x8xf32>
    %36 = vector.shape_cast %35 : vector<1x8x8xf32> to vector<8x8xf32>
    %cst_39 = arith.constant dense<0.000000e+00> : vector<16x8xf32>
    %37 = tpu.matmul %34, %36, %cst_39 {dimension_numbers = #tpu.dot_dimension_numbers<[1], [0], [0], [1], [0, 0, 1, 1], [], []>} : vector<16x8xf32>, vector<8x8xf32>, vector<16x8xf32> -> vector<16x8xf32>
    %38 = arith.addf %33, %37 : vector<16x8xf32>
    %c4_40 = arith.constant 4 : index
    %c0_41 = arith.constant 0 : index
    %39 = vector.load %arg12[%c4_40, %c0_41] : memref<20x8xf32, #tpu.memory_space<vmem>>, vector<16x8xf32>
    %c2_42 = arith.constant 2 : index
    %c0_43 = arith.constant 0 : index
    %c0_44 = arith.constant 0 : index
    %40 = vector.load %arg6[%c2_42, %c0_43, %c0_44] : memref<3x8x8xf32, #tpu.memory_space<vmem>>, vector<1x8x8xf32>
    %41 = vector.shape_cast %40 : vector<1x8x8xf32> to vector<8x8xf32>
    %cst_45 = arith.constant dense<0.000000e+00> : vector<16x8xf32>
    %42 = tpu.matmul %39, %41, %cst_45 {dimension_numbers = #tpu.dot_dimension_numbers<[1], [0], [0], [1], [0, 0, 1, 1], [], []>} : vector<16x8xf32>, vector<8x8xf32>, vector<16x8xf32> -> vector<16x8xf32>
    %43 = arith.addf %38, %42 : vector<16x8xf32>
    %c0_46 = arith.constant 0 : index
    %c0_47 = arith.constant 0 : index
    %44 = vector.load %arg7[%c0_46, %c0_47] : memref<1x8xf32, #tpu.memory_space<vmem>>, vector<1x8xf32>
    %45 = vector.broadcast %44 : vector<1x8xf32> to vector<16x8xf32>
    %46 = arith.addf %43, %45 : vector<16x8xf32>
    %cst_48 = arith.constant 0.000000e+00 : f32
    %47 = vector.broadcast %cst_48 : f32 to vector<16x8xf32>
    %48 = arith.maximumf %46, %47 : vector<16x8xf32>
    %c0_49 = arith.constant 0 : index
    %c0_50 = arith.constant 0 : index
    %c0_51 = arith.constant 0 : index
    %49 = vector.load %arg3[%c0_49, %c0_50, %c0_51] : memref<1x16x4xf32, #tpu.memory_space<vmem>>, vector<1x16x4xf32>
    %50 = vector.shape_cast %49 : vector<1x16x4xf32> to vector<16x4xf32>
    %c0_52 = arith.constant 0 : index
    %c0_53 = arith.constant 0 : index
    %51 = vector.load %arg8[%c0_52, %c0_53] : memref<4x8xf32, #tpu.memory_space<vmem>>, vector<4x8xf32>
    %cst_54 = arith.constant dense<0.000000e+00> : vector<16x8xf32>
    %52 = tpu.matmul %50, %51, %cst_54 {dimension_numbers = #tpu.dot_dimension_numbers<[1], [0], [0], [1], [0, 0, 1, 1], [], []>} : vector<16x4xf32>, vector<4x8xf32>, vector<16x8xf32> -> vector<16x8xf32>
    %c0_55 = arith.constant 0 : index
    %c0_56 = arith.constant 0 : index
    %53 = vector.load %arg9[%c0_55, %c0_56] : memref<1x8xf32, #tpu.memory_space<vmem>>, vector<1x8xf32>
    %54 = vector.broadcast %53 : vector<1x8xf32> to vector<16x8xf32>
    %55 = arith.addf %52, %54 : vector<16x8xf32>
    %56 = arith.addf %48, %55 : vector<16x8xf32>
    %cst_57 = arith.constant 0.000000e+00 : f32
    %57 = vector.broadcast %cst_57 : f32 to vector<16x8xf32>
    %58 = arith.maximumf %56, %57 : vector<16x8xf32>
    %c0_58 = arith.constant 0 : index
    %c0_59 = arith.constant 0 : index
    %c0_60 = arith.constant 0 : index
    %59 = vector.load %arg10[%c0_58, %c0_59, %c0_60] : memref<1x16x8xf32, #tpu.memory_space<vmem>>, vector<1x16x8xf32>
    %60 = vector.shape_cast %59 : vector<1x16x8xf32> to vector<16x8xf32>
    %61 = vector.shape_cast %58 : vector<16x8xf32> to vector<1x16x8xf32>
    tpu.vector_store %arg10[%c0_58, %c0_59, %c0_60], %61 {strides = array<i32>} : memref<1x16x8xf32, #tpu.memory_space<vmem>>, vector<1x16x8xf32>,
    return
  }
  func.func @transform_0(%arg0: i32, %arg1: i32) -> (i32, i32, i32, i32) {
    %c0_i32 = arith.constant 0 : i32
    %c0_i32_0 = arith.constant 0 : i32
    %c0_i32_1 = arith.constant 0 : i32
    return %arg0, %arg1, %c0_i32, %c0_i32_0 : i32, i32, i32, i32
  }
  func.func @transform_1(%arg0: i32, %arg1: i32) -> (i32, i32, i32) {
    %c0_i32 = arith.constant 0 : i32
    %c0_i32_0 = arith.constant 0 : i32
    return %arg0, %arg1, %c0_i32 : i32, i32, i32
  }
  func.func @transform_2(%arg0: i32, %arg1: i32) -> (i32, i32, i32) {
    %c0_i32 = arith.constant 0 : i32
    %c0_i32_0 = arith.constant 0 : i32
    %c0_i32_1 = arith.constant 0 : i32
    %c0_i32_2 = arith.constant 0 : i32
    return %c0_i32, %c0_i32_0, %c0_i32_1 : i32, i32, i32
  }
  func.func @transform_3(%arg0: i32, %arg1: i32) -> (i32, i32) {
    %c0_i32 = arith.constant 0 : i32
    %c0_i32_0 = arith.constant 0 : i32
    %c0_i32_1 = arith.constant 0 : i32
    return %c0_i32, %c0_i32_0 : i32, i32
  }
  func.func @transform_4(%arg0: i32, %arg1: i32) -> (i32, i32, i32) {
    %c0_i32 = arith.constant 0 : i32
    %c0_i32_0 = arith.constant 0 : i32
    %c0_i32_1 = arith.constant 0 : i32
    %c0_i32_2 = arith.constant 0 : i32
    return %c0_i32, %c0_i32_0, %c0_i32_1 : i32, i32, i32
  }
  func.func @transform_5(%arg0: i32, %arg1: i32) -> (i32, i32) {
    %c0_i32 = arith.constant 0 : i32
    %c0_i32_0 = arith.constant 0 : i32
    %c0_i32_1 = arith.constant 0 : i32
    return %c0_i32, %c0_i32_0 : i32, i32
  }
  func.func @transform_6(%arg0: i32, %arg1: i32) -> (i32, i32) {
    %c0_i32 = arith.constant 0 : i32
    %c0_i32_0 = arith.constant 0 : i32
    %c0_i32_1 = arith.constant 0 : i32
    return %c0_i32, %c0_i32_0 : i32, i32
  }
  func.func @transform_7(%arg0: i32, %arg1: i32) -> (i32, i32) {
    %c0_i32 = arith.constant 0 : i32
    %c0_i32_0 = arith.constant 0 : i32
    %c0_i32_1 = arith.constant 0 : i32
    return %c0_i32, %c0_i32_0 : i32, i32
  }
  func.func @transform_8(%arg0: i32, %arg1: i32) -> (i32, i32, i32) {
    %c0_i32 = arith.constant 0 : i32
    %c0_i32_0 = arith.constant 0 : i32
    return %arg0, %arg1, %c0_i32 : i32, i32, i32
  }
}

</mosaic_0001>

<bundles_post_ra>
// kernel: tpu_custom_call.1
= control target key start
LH: loop header
LB: loop body
LE: loop exit
PB: predicated region body
PF: predicated region fallthrough
CT: control target
= control target key end

     0   :  { %s1456_s27 = smov 0   ;;  %s1458_s28 = smov 0   ;;  %s1602_s0 = inlined_call_operand.vmem [shape: f32[2,2,8,4], index: 0, kind: input, shape index: {}]   ;;  %s1603_s1 = inlined_call_operand.vmem [shape: f32[2,32,4], index: 1, kind: input, shape index: {}]   ;;  %s1604_s2 = inlined_call_operand.vmem [shape: f32[3,4,8], index: 2, kind: input, shape index: {}]   ;;  %s1605_s3 = inlined_call_operand.vmem [shape: f32[1,8], index: 3, kind: input, shape index: {}]   ;;  %s1606_s4 = inlined_call_operand.vmem [shape: f32[3,8,8], index: 4, kind: input, shape index: {}]   ;;  %s1607_s5 = inlined_call_operand.vmem [shape: f32[1,8], index: 5, kind: input, shape index: {}]   ;;  %s1608_s6 = inlined_call_operand.vmem [shape: f32[4,8], index: 6, kind: input, shape index: {}]   ;;  %s1609_s7 = inlined_call_operand.vmem [shape: f32[1,8], index: 7, kind: input, shape index: {}]   ;;  %s1610_s8 = inlined_call_operand.vmem [shape: f32[2,32,8], index: 8, kind: output, shape index: {}]  }
   0x1   :  { %s1460_s29 = smov 0   ;;  %s1462_s30 = smov 0  }
   0x2   :  { %s1464_s9 = smov 0  }
   0x3 LB: > { %s27_s10 = sadd.s32 1, %s1399_s29  ;;  %s30_s11 = sadd.s32 1, %s1403_s30  ;;  %s1407_s9 = sphi %s1464_s9, %s18_s9   ;;  %s1403_s30 = sphi %s1462_s30, %s1614_s30   ;;  %s1399_s29 = sphi %s1460_s29, %s1613_s29   ;;  %s1395_s28 = sphi %s1458_s28, %s1612_s28   ;;  %s1391_s27 = sphi %s1456_s27, %s1611_s27  }
   0x4   : > { %p28_p0 = scmp.ge.s32.totalorder %s27_s10, 2  ;;  %p1205_p1 = scmp.ge.s32.totalorder %s1407_s9, 1 }
   0x5   : > { %p298_p2 = scmp.lt.s32.totalorder %s1407_s9, 5 }
   0x6   : > { %s1616_s10 = smov (%p28_p0, %s27_s10), 0  ;;  %s1618_s11 = smov (!%p28_p0, %s30_s11), %s1403_s30 }
   0x7   : > { %p299_p3 = pnand %p1205_p1, %p298_p2  ;;  %p32_p4 = scmp.ge.s32.totalorder %s1618_s11, 2 }
   0x8   : > { %v1214_v0 = vld [vmem:[%s1604_s2 + $0x4] sm:$0xf] (!%p299_p3)  ;;  %vm401_vm0 = vcmask (!%p299_p3), 1043456   ;;  %p348_p5 = scmp.lt.s32.totalorder (!%p299_p3), %s1395_s28, 1  ;;  %v1409_v1 = vmov (!%p299_p3), 0.0   ;;  %p350_p6 = scmp.lt.s32.totalorder (!%p299_p3), %s1391_s27, 1 }
   0x9   : > { %s1620_s11 = smov (%p32_p4, %s1618_s11), 0  ;;  %302 = sbr.rel (%p299_p3) target bundleno = 527 (0x20f), region = 52 }
   0xa   : > { %1270 = vmatprep.subr.mxu0 (!%p299_p3), %v1409_v1  ;;  %1281 = vmatprep.subr.mxu1 (!%p299_p3), %v1409_v1  ;;  %v386_v2 = vld [vmem:[%s1604_s2] sm:$0xf] (!%p299_p3)  ;;  %s1208_s16 = sshll.u32 (!%p299_p3), %s1391_s27, 1  ;;  %vm1410_vm1 = vmmov (!%p299_p3), 0   ;;  %vm377_vm2 = vcmask (!%p299_p3), 31744   ;;  %vm690_vm3 = vcmask (!%p299_p3), 64512  }
   0xb   : > { %1271 = vmatpush3.msk.msra.mxu0 (!%p299_p3), %vm401_vm0, %v1214_v0  ;;  %1272 = vmatprep.mubr.msk.f32.mxu0 (!%p299_p3), %vm1410_vm1, %v1409_v1  ;;  %p359_p7 = scmp.lt.s32.totalorder (!%p299_p3), %s1208_s16, 3  ;;  %v1223_v7 = vld [vmem:[%s1604_s2 + $0x8] sm:$0xf] (!%p299_p3)  ;;  %v1228_v32 = vld [vmem:[%s1605_s3] ss:$0 sm:$0xff] (!%p299_p3)  ;;  %vm693_vm4 = vcmask (!%p299_p3), 60416  }
   0xc   : > { %1282 = vmatpush3.msk.msra.mxu1 (!%p299_p3), %vm401_vm0, %v386_v2  ;;  %1283 = vmatprep.mubr.msk.f32.mxu1 (!%p299_p3), %vm1410_vm1, %v1409_v1 }
   0xd   : > { %1292 = vmatprep.subr.mxu0 (!%p299_p3), %v1409_v1 }
  0x10   : > { %s1622_s28 = smov (!%p348_p5, %s1395_s28), 1  ;;  %s1624_s16 = smov (!%p359_p7, %s1208_s16), 3 }
  0x11   : > { %s351_s17 = scalar_select %p350_p6, %s1391_s27, 1 }
  0x12   : > { %s1206_s18 = sshll.u32 %s1622_s28, 1  ;;  %s1209_s24 = sshll.u32 %s1622_s28, 2 }
  0x13   : > { %s353_s19 = sadd.s32 %s1206_s18, %s351_s17  ;;  %s362_s25 = sadd.s32 %s1209_s24, %s1624_s16 }
  0x14   : > { %s1207_s20 = sshll.u32 %s353_s19, 3  ;;  %s1210_s26 = sshll.u32 %s362_s25, 3 }
  0x15   : > { %s355_s23 = scalar_lea.vmem %s1602_s0, %s1207_s20  ;;  %s1508_s14 = scalar_lea.vmem %s1603_s1, %s1210_s26 }
  0x16   : > { %v376_v3 = vld [vmem:[%s355_s23] sm:$0xff]  ;;  %s1513_s18 = scalar_lea.vmem %s1610_s8, %s1210_s26  ;;  %v380_v5 = vld [vmem:[%s1508_s14 + $0x8] sm:$0xff]  ;;  %s1229_s19 = sshll.u32 %s1391_s27, 4 }
  0x17   : > { %378 = vst.msk [vmem:[#allocation2] sm:$0xff] %vm377_vm2, %v376_v3  ;;  %v379_v4 = vld [vmem:[%s1508_s14] sm:$0xff]  ;;  %382 = vst.msk [vmem:[#allocation2 + $0x10] sm:$0xff] %vm377_vm2, %v380_v5  ;;  %p1230_p8 = scmp.ge.s32.totalorder %s1229_s19, 4 }
  0x18   : > { %381 = vst.msk [vmem:[#allocation2 + $0x8] sm:$0xff] %vm377_vm2, %v379_v4  ;;  %v700_v47 = vlaneseq (!%p1230_p8)  ;;  %v704_v48 = vstv (!%p1230_p8), %s1229_s19 }
  0x1a   : > { %v701_v49 = vshrl.u32 (!%p1230_p8), %v700_v47, 7 }
  0x1c   : > { %v705_v50 = vadd.s32 (!%p1230_p8), %v704_v48, %v701_v49  ;;  %v702_v52 = vadd.s32 (!%p1230_p8), 8, %v701_v49  ;;  %v703_v53 = vadd.s32 (!%p1230_p8), 16, %v701_v49 }
  0x1e   : > { %v383_v6 = vld [vmem:[#allocation2] sm:$0xff]  ;;  %v385_v11 = vld [vmem:[#allocation2 + $0x10] sm:$0xf]  ;;  %v579_v15 = vld [vmem:[#allocation2 + $0x14] sm:$0xf]  ;;  %vm708_vm5 = vcmp.lt.s32.totalorder (!%p1230_p8), %v705_v50, 4  ;;  %v706_v54 = vadd.s32 (!%p1230_p8), %v704_v48, %v702_v52  ;;  %v707_v56 = vadd.s32 (!%p1230_p8), %v704_v48, %v703_v53 }
  0x1f   : > { %1284 = vmatmul.mubr.msk.f32.vlgmr.msra.gmra.mrb[0].mxu1 %vm377_vm2, %v383_v6  ;;  %v387_v8 = vld [vmem:[#allocation2 + $0x2] sm:$0xff]  ;;  %v388_v10 = vld [vmem:[#allocation2 + $0xa] sm:$0xff]  ;;  %v389_v12 = vld [vmem:[#allocation2 + $0x12] sm:$0xf] }
  0x20   : > { %1286 = vmatprep.mubr.msk.f32.mxu1 %vm1410_vm1, %v1409_v1  ;;  %v384_v9 = vld [vmem:[#allocation2 + $0x8] sm:$0xff]  ;;  %1273 = vmatmul.mubr.msk.f32.vlgmr.msra.gmra.mrb[0].mxu0 %vm377_vm2, %v387_v8  ;;  %vm709_vm6 = vcmp.lt.s32.totalorder (!%p1230_p8), %v706_v54, 4  ;;  %vm710_vm7 = vcmp.lt.s32.totalorder (!%p1230_p8), %v707_v56, 4 }
  0x21   : > { %1293 = vmatpush3.msk.msra.mxu0 %vm401_vm0, %v1223_v7  ;;  %1275 = vmatprep.mubr.msk.f32.mxu0 %vm1410_vm1, %v1409_v1  ;;  %v577_v13 = vld [vmem:[#allocation2 + $0x4] sm:$0xff]  ;;  %v578_v14 = vld [vmem:[#allocation2 + $0xc] sm:$0xff] }
  0x23   : > { %1287 = vmatmul.mubr.msk.f32.gmra.mrb[2].mxu1 %vm377_vm2, %v384_v9 }
  0x24   : > { %1289 = vmatprep.mubr.msk.f32.mxu1 %vm1410_vm1, %v1409_v1  ;;  %1276 = vmatmul.mubr.msk.f32.gmra.mrb[2].mxu0 %vm377_vm2, %v388_v10 }
  0x25   : > { %1278 = vmatprep.mubr.msk.f32.mxu0 %vm1410_vm1, %v1409_v1 }
  0x27   : > { %1290 = vmatmul.mubr.msk.f32.gmra.mrb[4].mxu1 %vm377_vm2, %v385_v11 }
  0x28   : > { %1279 = vmatmul.mubr.msk.f32.gmra.mrb[4].mxu0 %vm377_vm2, %v389_v12 }
  0x29   : > { %1294 = vmatprep.mubr.msk.f32.mxu0 %vm1410_vm1, %v1409_v1 }
  0x2c   : > { %1295 = vmatmul.mubr.msk.f32.vlgmr.msra.gmra.mrb[6].mxu0 %vm377_vm2, %v577_v13 }
  0x2d   : > { %1297 = vmatprep.mubr.msk.f32.mxu0 %vm1410_vm1, %v1409_v1 }
  0x30   : > { %1298 = vmatmul.mubr.msk.f32.gmra.mrb[8].mxu0 %vm377_vm2, %v578_v14 }
  0x31   : > { %1300 = vmatprep.mubr.msk.f32.mxu0 %vm1410_vm1, %v1409_v1 }
  0x34   : > { %1301 = vmatmul.mubr.msk.f32.gmra.mrb[10].mxu0 %vm377_vm2, %v579_v15 }
  0xf2   : > { %v563_v16 = vpop.f32.mrb[0].mxu1 }
  0xf3   : > { %v1285_v17 = vpop.f32.mrb[1].mxu1  ;;  %v471_v18 = vpop.f32.mrb[0].mxu0 }
  0xf4   : > { %v564_v20 = vadd.f32 %v563_v16, %v471_v18  ;;  %v1274_v21 = vpop.f32.mrb[1].mxu0 }
  0xf6   : > { %v568_v19 = vpop.f32.mrb[2].mxu1 }
  0xf7   : > { %v1288_v22 = vpop.f32.mrb[3].mxu1  ;;  %v476_v23 = vpop.f32.mrb[2].mxu0 }
  0xf8   : > { %v569_v25 = vadd.f32 %v568_v19, %v476_v23  ;;  %v1277_v26 = vpop.f32.mrb[3].mxu0 }
  0xfa   : > { %v573_v24 = vpop.f32.mrb[4].mxu1 }
  0xfb   : > { %v1291_v27 = vpop.f32.mrb[5].mxu1  ;;  %v481_v28 = vpop.f32.mrb[4].mxu0 }
  0xfc   : > { %v574_v29 = vadd.f32 %v573_v24, %v481_v28  ;;  %v1280_v30 = vpop.f32.mrb[5].mxu0 }
  0xff   : > { %v660_v31 = vpop.f32.mrb[6].mxu0 }
 0x100   : > { %v674_v33 = vadd.f32 %v660_v31, %v564_v20  ;;  %v1296_v34 = vpop.f32.mrb[7].mxu0 }
 0x102   : > { %v684_v35 = vadd.f32 %v1228_v32, %v674_v33 }
 0x103   : > { %v665_v36 = vpop.f32.mrb[8].mxu0 }
 0x104   : > { %v687_v37 = vmax.f32 %v684_v35, 0.0  ;;  %v675_v38 = vadd.f32 %v665_v36, %v569_v25  ;;  %v1299_v39 = vpop.f32.mrb[9].mxu0 }
 0x106   : > { %691 = vst.msk [vmem:[#allocation3] sm:$0xff] %vm690_vm3, %v687_v37  ;;  %v685_v40 = vadd.f32 %v1228_v32, %v675_v38 }
 0x107   : > { %v670_v41 = vpop.f32.mrb[10].mxu0 }
 0x108   : > { %v688_v42 = vmax.f32 %v685_v40, 0.0  ;;  %v676_v43 = vadd.f32 %v670_v41, %v574_v29  ;;  %v1302_v44 = vpop.f32.mrb[11].mxu0  ;;  %699 = sbr.rel (%p1230_p8) target bundleno = 280 (0x118), region = 56 }
 0x10a   : > { %692 = vst.msk [vmem:[#allocation3 + $0x8] sm:$0xff] %vm690_vm3, %v688_v42  ;;  %v686_v45 = vadd.f32 %v1228_v32, %v676_v43 }
 0x10c   : > { %v689_v46 = vmax.f32 %v686_v45, 0.0 }
 0x10d   : > { %v711_v51 = vld [vmem:[#allocation3] sm:$0xff] (!%p1230_p8) }
 0x10e   : > { %694 = vst.msk [vmem:[#allocation3 + $0x10] sm:$0xf] %vm693_vm4, %v689_v46  ;;  %v720_v58 = vsel (!%p1230_p8), %vm708_vm5, 0.0, %v711_v51 }
 0x10f   : > { %723 = vst.msk [vmem:[#allocation3] sm:$0xff] %vm690_vm3, %v720_v58 }
 0x111   : > { %v712_v55 = vld [vmem:[#allocation3 + $0x8] sm:$0xff] }
 0x112   : > { %v721_v59 = vsel %vm709_vm6, 0.0, %v712_v55 }
 0x113   : > { %724 = vst.msk [vmem:[#allocation3 + $0x8] sm:$0xff] %vm690_vm3, %v721_v59 }
 0x115   : > { %v713_v57 = vld [vmem:[#allocation3 + $0x10] sm:$0xf] }
 0x116   : > { %v722_v60 = vsel %vm710_vm7, 0.0, %v713_v57 }
 0x117   : > { %725 = vst.msk [vmem:[#allocation3 + $0x10] sm:$0xf] %vm693_vm4, %v722_v60 }
 0x118 PF: > { %v1231_v61 = vld [vmem:[%s1606_s4 + $0x8] sm:$0xff]  ;;  %v728_v0 = vld [vmem:[%s1606_s4] sm:$0xff]  ;;  %v1236_v2 = vld [vmem:[%s1606_s4 + $0x10] sm:$0xff] }
 0x119   : > { %1303 = vmatprep.subr.mxu1 %v1231_v61  ;;  %v995_v3 = vld [vmem:[%s1608_s6] sm:$0xf]  ;;  %v994_v5 = vld [vmem:[%s1508_s14 + $0x8] sm:$0xff] }
 0x11a   : > { %1304 = vmatpush3.msra.mxu1 %v1231_v61  ;;  %v993_v4 = vld [vmem:[%s1508_s14] sm:$0xff]  ;;  %1318 = vmatprep.subr.msk.mxu0 %vm401_vm0, %v995_v3 }
 0x11b   : > { %1308 = vmatprep.subr.mxu1 %v728_v0  ;;  %1319 = vmatpush3.msk.msra.mxu0 %vm401_vm0, %v995_v3  ;;  %v727_v6 = vld [vmem:[#allocation3 + $0x8] sm:$0xff] }
 0x11c   : > { %1320 = vmatprep.mubr.msk.f32.mxu0 %vm377_vm2, %v993_v4  ;;  %v1239_v11 = vld [vmem:[%s1607_s5] ss:$0 sm:$0xff] }
 0x11d   : > { %1321 = vmatmul.mubr.msk.f32.vlgmr.msra.gmra.mrb[12].mxu0 %vm377_vm2, %v994_v5  ;;  %v1240_v12 = vld [vmem:[%s1609_s7] ss:$0 sm:$0xff] }
 0x11e   : > { %v730_v63 = vld [vmem:[#allocation3 + $0xa] sm:$0xff] }
 0x11f   : > { %v729_v62 = vld [vmem:[#allocation3 + $0x2] sm:$0xff]  ;;  %v896_v8 = vld [vmem:[#allocation3 + $0xc] sm:$0xff] }
 0x120   : > { %1305 = vmatprep.mubr.msk.f32.mxu1 %vm690_vm3, %v729_v62  ;;  %v726_v1 = vld [vmem:[#allocation3] sm:$0xff] }
 0x121   : > { %1306 = vmatmul.mubr.msk.f32.vlgmr.msra.gmra.mrb[6].mxu1 %vm690_vm3, %v730_v63  ;;  %v895_v7 = vld [vmem:[#allocation3 + $0x4] sm:$0xff] }
 0x122   : > { %1309 = vmatpush3.msra.mxu1 %v728_v0  ;;  %1310 = vmatprep.mubr.msk.f32.mxu1 %vm690_vm3, %v726_v1 }
 0x123   : > { %1313 = vmatprep.subr.mxu1 %v1236_v2 }
 0x129   : > { %1311 = vmatmul.mubr.msk.f32.vlgmr.msra.gmra.mrb[6].mxu1 %vm690_vm3, %v727_v6 }
 0x12a   : > { %1314 = vmatpush3.msra.mxu1 %v1236_v2  ;;  %1315 = vmatprep.mubr.msk.f32.mxu1 %vm690_vm3, %v895_v7 }
 0x131   : > { %1316 = vmatmul.mubr.msk.f32.vlgmr.msra.gmra.mrb[6].mxu1 %vm690_vm3, %v896_v8 }
 0x1f0   : > { %v1322_v9 = vpop.f32.mrb[12].mxu0 }
 0x1f1   : > { %v1078_v10 = vpop.f32.mrb[13].mxu0  ;;  %v1084_v16 = vadd.f32 %v1322_v9, %v1240_v12 }
 0x1f2   : > { %v1079_v18 = vadd.f32 %v1240_v12, %v1078_v10 }
 0x204   : > { %v1317_v13 = vpop.f32.mrb[6].mxu1 }
 0x205   : > { %v990_v14 = vadd.f32 %v1317_v13, %v1239_v11  ;;  %v971_v15 = vpop.f32.mrb[7].mxu1 }
 0x206   : > { %v989_v17 = vadd.f32 %v1239_v11, %v971_v15 }
 0x207   : > { %v992_v19 = vmax.f32 %v990_v14, 0.0 }
 0x208   : > { %v991_v20 = vmax.f32 %v989_v17, 0.0 }
 0x209   : > { %v1088_v21 = vadd.f32 %v1084_v16, %v992_v19 }
 0x20a   : > { %v1087_v22 = vadd.f32 %v1079_v18, %v991_v20 }
 0x20b   : > { %v1090_v23 = vmax.f32 %v1088_v21, 0.0 }
 0x20c   : > { %v1089_v24 = vmax.f32 %v1087_v22, 0.0 }
 0x20d   : > { %1092 = vst.msk [vmem:[%s1513_s18 + $0x8] sm:$0xff] %vm690_vm3, %v1090_v23 }
 0x20e   : > { %1091 = vst.msk [vmem:[%s1513_s18] sm:$0xff] %vm690_vm3, %v1089_v24 }
 0x20f PF: > { %s18_s9 = sadd.s32 1, %s1407_s9   ;;  %s1611_s27 = smov %s1399_s29 }
 0x210   : > { %p15_p9 = scmp.ge.s32.totalorder %s18_s9, 6   ;;  %s1612_s28 = smov %s1403_s30 }
 0x211   : > { %s1613_s29 = smov %s1616_s10  ;;  %s1614_s30 = smov %s1620_s11 }
 0x212   :  { %17 = sbr.rel (!%p15_p9) target bundleno = 3 (0x3), region = 93 }

</bundles_post_ra>
